<compile_context>
chip_gen: v6e
topology: v6e:2x2x1
jax: 0.10.0
libtpu: 0.0.40
codegen_flags: <defaults>
</compile_context>

<pallas_src>
import functools

import jax
import jax.numpy as jnp
from jax.experimental import pallas as pl
from jax.experimental.pallas import tpu as pltpu


def _round_up(n: int, m: int) -> int:
    return ((n + m - 1) // m) * m


def tempf_kernel(x_ref, w_ref, b_ref, o_ref):
    # x: (TB, Cin), w: (Cin, TN) (pre-transposed Linear weight), b: (1, TN)
    acc = jnp.dot(x_ref[...], w_ref[...], preferred_element_type=jnp.float32)
    o_ref[...] = (acc + b_ref[...].astype(jnp.float32)).astype(o_ref.dtype)


@functools.partial(jax.jit, static_argnames=("block_b", "block_n", "use_bf16"))
def tempf_forward(h, x, params, *, block_b=1024, block_n=1024, use_bf16=False):
    """Matches tempf.forward(h, x): returns dense1(x). `h` is unused."""
    del h  # unused by the reference forward pass
    w_t, b = params                      # w_t: (Cin, Cout), b: (1, Cout)
    B, Cin = x.shape
    Cout = w_t.shape[1]
    assert w_t.shape[0] == Cin, "weight / input feature mismatch"

    out_dtype = x.dtype
    if use_bf16:
        x = x.astype(jnp.bfloat16)
        w_t = w_t.astype(jnp.bfloat16)

    # Lane-dense output guard: pad Cout up to a multiple of 128 (weight/bias
    # only -- negligible traffic, keeps output stores unmasked).
    Cout_p = _round_up(Cout, 128)
    if Cout_p != Cout:
        w_t = jnp.pad(w_t, ((0, 0), (0, Cout_p - Cout)))
        b = jnp.pad(b, ((0, 0), (0, Cout_p - Cout)))

    # Batch tile: multiple of 8 sublanes, capped at block_b, and for mid-size
    # B split into >= 2 grid steps so both v7x TensorCores get work.
    if B <= 8:
        TB = 8
    else:
        TB = min(block_b, _round_up(pl.cdiv(B, 2), 8))
    TB = max(8, TB)
    # Output-feature tile: multiple of 128 lanes.
    TN = min(_round_up(block_n, 128), Cout_p)

    nb = pl.cdiv(B, TB)
    nn = pl.cdiv(Cout_p, TN)

    out_itemsize = jnp.dtype(out_dtype).itemsize
    cost = pl.CostEstimate(
        flops=2 * B * Cin * Cout_p,
        transcendentals=0,
        bytes_accessed=(B * Cin * x.dtype.itemsize
                        + Cin * Cout_p * w_t.dtype.itemsize
                        + Cout_p * b.dtype.itemsize
                        + B * Cout_p * out_itemsize),
    )

    # Per-step VMEM need (double-buffered tiles). Raise the scoped limit only
    # when v5e's 16 MiB default would be exceeded; cap at v7x's 64 MiB.
    vmem_needed = 2 * (TB * Cin * x.dtype.itemsize
                       + Cin * TN * w_t.dtype.itemsize
                       + TN * b.dtype.itemsize
                       + TB * TN * out_itemsize)
    cparams = {}
    if vmem_needed > 12 * 1024 * 1024:
        cparams["vmem_limit_bytes"] = int(min(vmem_needed + (8 << 20), 64 << 20))

    if nb * nn == 1:
        # Tiny case: no grid, no pipeline machinery -- single VMEM-resident call.
        out = pl.pallas_call(
            tempf_kernel,
            out_shape=jax.ShapeDtypeStruct((B, Cout_p), out_dtype),
            in_specs=[pl.BlockSpec(memory_space=pltpu.MemorySpace.VMEM)] * 3,
            out_specs=pl.BlockSpec(memory_space=pltpu.MemorySpace.VMEM),
            compiler_params=pltpu.CompilerParams(**cparams),
            cost_estimate=cost,
        )(x, w_t, b)
    else:
        out = pl.pallas_call(
            tempf_kernel,
            out_shape=jax.ShapeDtypeStruct((B, Cout_p), out_dtype),
            grid=(nb, nn),
            in_specs=[
                pl.BlockSpec((TB, Cin), lambda i, j: (i, 0)),    # batch-tiled x
                pl.BlockSpec((Cin, TN), lambda i, j: (0, j)),    # weight col-tile
                pl.BlockSpec((1, TN), lambda i, j: (0, j)),      # bias col-tile
            ],
            out_specs=pl.BlockSpec((TB, TN), lambda i, j: (i, j)),
            compiler_params=pltpu.CompilerParams(
                dimension_semantics=("parallel", "parallel"), **cparams),
            cost_estimate=cost,
        )(x, w_t, b)

    if Cout_p != Cout:
        out = out[:, :Cout]
    return out


def init_params(key, in_channels, out_channels):
    """PyTorch nn.Linear default init; weight returned pre-transposed."""
    k1, k2 = jax.random.split(key)
    bound = 1.0 / jnp.sqrt(jnp.float32(in_channels))
    w = jax.random.uniform(k1, (out_channels, in_channels), jnp.float32,
                           -bound, bound)
    b = jax.random.uniform(k2, (1, out_channels), jnp.float32, -bound, bound)
    return (w.T, b)   # (in_channels, out_channels), (1, out_channels)


def reference_forward(h, x, params):
    del h
    w_t, b = params
    return jnp.dot(x, w_t, precision=jax.lax.Precision.HIGHEST) + b


if __name__ == "__main__":
    key = jax.random.PRNGKey(0)
    kh, kx, kp, kx2, kp2 = jax.random.split(key, 5)

    # Case 1: tiny, spec-consistent shapes -> single-block (no-grid) path.
    B, Cin, Cout = 8, 32, 128
    h = jax.random.normal(kh, (B, Cout), jnp.float32)   # ignored by forward
    x = jax.random.normal(kx, (B, Cin), jnp.float32)
    params = init_params(kp, Cin, Cout)

    out = jax.block_until_ready(tempf_forward(h, x, params))
    ref = reference_forward(h, x, params)
    assert out.shape == (B, Cout)
    assert jnp.allclose(out, ref, atol=1e-4, rtol=1e-4), "mismatch (tiny case)"

    # Case 2: ragged batch + Cout blocking -> exercises the tiled grid path
    # (partial last batch block masked on store, 2-D parallel grid).
    B2, Cin2, Cout2 = 270, 32, 256
    h2 = jnp.zeros((B2, Cout2), jnp.float32)
    x2 = jax.random.normal(kx2, (B2, Cin2), jnp.float32)
    params2 = init_params(kp2, Cin2, Cout2)

    out2 = jax.block_until_ready(
        tempf_forward(h2, x2, params2, block_b=64, block_n=128))
    ref2 = reference_forward(h2, x2, params2)
    assert out2.shape == (B2, Cout2)
    assert jnp.allclose(out2, ref2, atol=1e-4, rtol=1e-4), "mismatch (grid case)"

    print("KERNEL_OK")
</pallas_src>

<mosaic_0001>
module attributes {stable_mosaic.version = 11 : i64} {
  func.func @tempf_kernel(%arg0: memref<8x32xf32, #tpu.memory_space<vmem>>, %arg1: memref<32x128xf32, #tpu.memory_space<vmem>>, %arg2: memref<1x128xf32, #tpu.memory_space<vmem>>, %arg3: memref<8x128xf32, #tpu.memory_space<vmem>>) attributes {dimension_semantics = [], scalar_prefetch = 0 : i64, scratch_operands = 0 : i64, tpu.core_type = #tpu.core_type<tc>} {
    %c0 = arith.constant 0 : index
    %c0_0 = arith.constant 0 : index
    %0 = vector.load %arg0[%c0, %c0_0] : memref<8x32xf32, #tpu.memory_space<vmem>>, vector<8x32xf32>
    %c0_1 = arith.constant 0 : index
    %c0_2 = arith.constant 0 : index
    %1 = vector.load %arg1[%c0_1, %c0_2] : memref<32x128xf32, #tpu.memory_space<vmem>>, vector<32x128xf32>
    %cst = arith.constant dense<0.000000e+00> : vector<8x128xf32>
    %2 = tpu.matmul %0, %1, %cst {dimension_numbers = #tpu.dot_dimension_numbers<[1], [0], [0], [1], [0, 0, 1, 1], [], []>} : vector<8x32xf32>, vector<32x128xf32>, vector<8x128xf32> -> vector<8x128xf32>
    %c0_3 = arith.constant 0 : index
    %c0_4 = arith.constant 0 : index
    %3 = vector.load %arg2[%c0_3, %c0_4] : memref<1x128xf32, #tpu.memory_space<vmem>>, vector<1x128xf32>
    %4 = vector.broadcast %3 : vector<1x128xf32> to vector<8x128xf32>
    %5 = arith.addf %2, %4 : vector<8x128xf32>
    %c0_5 = arith.constant 0 : index
    %c0_6 = arith.constant 0 : index
    %6 = vector.load %arg3[%c0_5, %c0_6] : memref<8x128xf32, #tpu.memory_space<vmem>>, vector<8x128xf32>
    tpu.vector_store %arg3[%c0_5, %c0_6], %5 {strides = array<i32>} : memref<8x128xf32, #tpu.memory_space<vmem>>, vector<8x128xf32>,
    return
  }
}

</mosaic_0001>

<bundles_post_ra>
// kernel: tempf_forward.1
= control target key start
LH: loop header
LB: loop body
LE: loop exit
PB: predicated region body
PF: predicated region fallthrough
CT: control target
= control target key end

     0   :  { %8 = vsyncpa [#allocation3], 0  ;;  %s274_s0 = inlined_call_operand.hbm [shape: f32[8,32], index: 0, kind: input, shape index: {}]   ;;  %s275_s1 = inlined_call_operand.hbm [shape: f32[32,128], index: 1, kind: input, shape index: {}]   ;;  %s276_s2 = inlined_call_operand.vmem [shape: f32[1,128], index: 2, kind: input, shape index: {}]   ;;  %s277_s3 = inlined_call_operand.hbm [shape: f32[8,128], index: 3, kind: output, shape index: {}]  }
   0x1   :  { %9 = vsyncpa [#allocation6], 0 }
   0x2   :  { %10 = vsyncpa [#allocation4], 0  ;;  %s235_s12 = smov [#allocation2]   ;;  %s236_s14 = smov [#allocation5]  }
   0x3   :  { %s17_s13 = sshll.u32 %s235_s12, 4  ;;  %s26_s15 = sshll.u32 %s236_s14, 4  ;;  %s18_s13 = int_to_ptr.vmem [resolvable:$true] %s17_s13  ;;  %s27_s15 = int_to_ptr.vmem [resolvable:$true] %s26_s15 }
   0x4   :  { %s177_s16 = scalar_lea.vmem %s18_s13, 128  ;;  %p182_p1 = scmp.lt.s32.totalorder %s18_s13, %s18_s13 }
   0x5   :  { %p178_p0 = scmp.ne.s32.totalorder %s18_s13, %s177_s16  ;;  %p183_p2 = scmp.lt.s32.totalorder %s177_s16, %s177_s16 }
   0x7   :  { %p184_p3 = por %p183_p2, %p182_p1 }
   0x9   :  { %p185_p4 = pnand %p184_p3, %p178_p0 }
   0xb   :  { %188 = shalt.err (!%p185_p4)
}
   0xc   :  { %20 = dma.hbm_to_vmem [thread:$0]  %s274_s0, 128, %s18_s13, [#allocation3]  }
   0xd   :  { %s197_s19 = scalar_lea.vmem %s27_s15, 512  ;;  %p202_p6 = scmp.lt.s32.totalorder %s27_s15, %s27_s15 }
   0xe   :  { %p198_p5 = scmp.ne.s32.totalorder %s27_s15, %s197_s19  ;;  %p203_p7 = scmp.lt.s32.totalorder %s197_s19, %s197_s19 }
  0x10   :  { %p204_p8 = por %p203_p7, %p202_p6 }
  0x12   :  { %p205_p9 = pnand %p204_p8, %p198_p5 }
  0x14   :  { %208 = shalt.err (!%p205_p9)
}
  0x15   :  { %s237_s20 = smov 128   ;;  %s238_s21 = smov 8  }
  0x16   :  { %32 = dma.hbm_to_vmem [thread:$0]  %s275_s1, 512, %s27_s15, [#allocation6], %s237_s20, %s237_s20, %s238_s21  }
  0x17   :  { %229 = dma.done.wait [#allocation3], 128  }
  0x18   :  { %230 = vsyncadd [#allocation3], 4294967168 }
  0x19   :  { %231 = dma.done.wait [#allocation6], 512  }
  0x1a   :  { %232 = vsyncadd [#allocation6], 4294966784  ;;  %v239_v0 = vmov 0.0   ;;  %vm240_vm0 = vmmov 0   ;;  %v45_v1 = vld [vmem:[#allocation5 + $0x18] sm:$0xff]  ;;  %v44_v2 = vld [vmem:[#allocation5 + $0x10] sm:$0xff] }
  0x1b   :  { %151 = vmatprep.subr.mxu0 %v239_v0  ;;  %159 = vmatprep.mubr.msk.f32.mxu0 %vm240_vm0, %v239_v0  ;;  %v43_v3 = vld [vmem:[#allocation5 + $0x8] sm:$0xff]  ;;  %v42_v4 = vld [vmem:[#allocation5] sm:$0xff]  ;;  %v41_v5 = vld [vmem:[#allocation2] sm:$0xff]  ;;  %vm53_vm1 = vcmask 261120   ;;  %s241_s24 = smov [#allocation7]  }
  0x1c   :  { %152 = vmatpush3.msra.mxu0 %v45_v1  ;;  %v144_v6 = vld [vmem:[%s276_s2] ss:$0 sm:$0xff]  ;;  %s134_s25 = sshll.u32 %s241_s24, 4  ;;  %s135_s25 = int_to_ptr.vmem [resolvable:$true] %s134_s25 }
  0x1d   :  { %153 = vmatprep.subr.mxu0 %v239_v0  ;;  %s209_s26 = scalar_lea.vmem %s135_s25, 128  ;;  %p214_p11 = scmp.lt.s32.totalorder %s135_s25, %s135_s25 }
  0x1e   :  { %154 = vmatpush3.msra.mxu0 %v44_v2  ;;  %p210_p10 = scmp.ne.s32.totalorder %s135_s25, %s209_s26  ;;  %p215_p12 = scmp.lt.s32.totalorder %s209_s26, %s209_s26 }
  0x1f   :  { %155 = vmatprep.subr.mxu0 %v239_v0 }
  0x20   :  { %156 = vmatpush3.msra.mxu0 %v43_v3  ;;  %p216_p13 = por %p215_p12, %p214_p11 }
  0x21   :  { %157 = vmatprep.subr.mxu0 %v239_v0 }
  0x22   :  { %158 = vmatpush3.msra.mxu0 %v42_v4  ;;  %p217_p0 = pnand %p216_p13, %p210_p10 }
  0x23   :  { %160 = vmatmul.mubr.msk.f32.vlgmr.msra.gmra.mxu0 %vm53_vm1, %v41_v5 }
  0xe3   :  { %v123_v7 = vpop.f32.mrf.mxu0 }
  0xe4   :  { %v124_v8 = vadd.f32 %v144_v6, %v123_v7 }
  0xe5   :  { %v161_v9 = vpop.f32.mrf.mxu0 }
  0xe6   :  { %127 = vst [vmem:[#allocation7] sm:$0xff] %v124_v8 }
  0xe7   :  { %220 = shalt.err (!%p217_p0)
}
  0xe8   :  { %137 = dma.vmem_to_hbm [thread:$0]  %s135_s25, 128, %s277_s3, [#allocation4]  }
  0xe9   :  { %233 = dma.done.wait [#allocation4], 128  }
  0xea   :  { %234 = vsyncadd [#allocation4], 4294967168 }
  0xeb   :  { %141 = vsyncpa [#allocation3], 1 }
  0xec   :  { %142 = vsyncpa [#allocation6], 1 }
  0xed   :  { %143 = vsyncpa [#allocation4], 1 }

</bundles_post_ra>
